<compile_context>
chip_gen: v5e
topology: v5e:2x2
jax: 0.10.0
libtpu: 0.0.40
codegen_flags: <defaults>
</compile_context>

<pallas_src>
import functools

import jax
import jax.numpy as jnp
from jax.experimental import pallas as pl
from jax.experimental.pallas import tpu as pltpu

N_CLASSES = 4
SMOOTH = 1e-5
_LANES = 128
_MAX_TILE_ROWS = 2048   # f32 score tile = 4 MiB; double-buffered total ~10.5 MiB VMEM
_ALIGN = 32             # lcm of sublane tiling for f32 (8) / bf16 (16) / int8 (32)


def _round_up(x, m):
    return (x + m - 1) // m * m


def _cdiv(a, b):
    return (a + b - 1) // b


def _plan_tiles(rows, max_tile_rows, n_split):
    """Return (tile_rows, nj_per_split, padded_rows)."""
    if n_split == 1 and rows <= max_tile_rows:
        # Single full-extent row block: always layout-legal, no padding/mask.
        return rows, 1, rows
    max_aligned = max(_ALIGN, (int(max_tile_rows) // _ALIGN) * _ALIGN)
    tile = min(max_aligned, _round_up(_cdiv(rows, n_split), _ALIGN))
    nj = _cdiv(rows, tile * n_split)
    return tile, nj, tile * n_split * nj


def _make_kernel(apply_sigmoid, needs_mask, tile_rows, nj_per_split, valid_rows):
    def kernel(score_ref, tgt_ref, out_ref):
        # score_ref : VMEM (4, tile_rows, 128)  native-dtype score tile
        # tgt_ref   : VMEM (tile_rows, 128)     narrow-int label tile
        # out_ref   : VMEM (12, 128) f32 lane partials, resident across the j axis
        #             rows 0..3 intersect_c, 4..7 z_sum_c, 8..11 y_sum_c
        j = pl.program_id(2)

        @pl.when(j == 0)
        def _init():
            out_ref[...] = jnp.zeros_like(out_ref)

        t = tgt_ref[...].astype(jnp.int32)        # widen in-register; HBM stays narrow
        m0 = (t == 0).astype(jnp.float32)
        m1 = (t == 3).astype(jnp.float32)
        t1 = (t == 1).astype(jnp.float32)
        m2 = m1 + t1                               # labels exclusive: OR == sum

        if needs_mask:
            # Padded rows carry label 0 and score 0; mask them out of classes 0/3.
            p = pl.program_id(0)
            row0 = (p * nj_per_split + j) * tile_rows
            local = jax.lax.broadcasted_iota(jnp.int32, (tile_rows, 1), 0)
            valid = ((local + row0) < valid_rows).astype(jnp.float32)  # (tile_rows, 1)
            m0 = m0 * valid
            m3 = valid - m0
            nvalid = jnp.sum(valid, axis=0, keepdims=True)             # (1, 1)
        else:
            valid = None
            m3 = 1.0 - m0
            nvalid = float(tile_rows)

        def fold(x):                               # (tile_rows, 128) -> (1, 128)
            return jnp.sum(x, axis=0, keepdims=True)

        masks = (m0, m1, m2, m3)
        inter, zsum = [], []
        for c in range(N_CLASSES):
            s = score_ref[c].astype(jnp.float32)
            if apply_sigmoid:
                s = 0.5 * (jnp.tanh(0.5 * s) + 1.0)   # sigmoid via a single EUP op
                if needs_mask:
                    s = s * valid                     # sigmoid(0)=0.5 at pads -> zero it
            inter.append(fold(s * masks[c]))          # intersect_c
            zsum.append(fold(s * s))                  # z_sum_c

        # y_sum: only three full folds needed; classes 2/3 derived from 0/1.
        y0 = fold(m0)
        y1 = fold(m1)
        y2 = y1 + fold(t1)
        y3 = nvalid - y0

        # One coalesced (12,128) RMW per tile instead of 12 single-row updates.
        out_ref[...] += jnp.concatenate(inter + zsum + [y0, y1, y2, y3], axis=0)

    return kernel


@functools.partial(jax.jit, static_argnames=("softmax", "max_tile_rows"))
def dice_loss_area(inputs, target, weight, softmax=False,
                   max_tile_rows=_MAX_TILE_ROWS):
    """Pallas TPU implementation of DiceLoss_area.forward."""
    B, C, H, W = inputs.shape
    assert C == N_CLASSES
    hw = H * W
    # TODO(synk): spatial extents with H*W % 128 != 0 would need lane-level
    # padding/masking; BraTS extents (e.g. 240*240 = 450*128) satisfy this.
    assert hw % _LANES == 0, "H*W must be a multiple of 128"
    rows = hw // _LANES

    # Keep scores in their native floating dtype (bf16/f16/f32); cast in-kernel.
    if not jnp.issubdtype(inputs.dtype, jnp.floating) or inputs.dtype.itemsize > 4:
        inputs = inputs.astype(jnp.float32)
    # Keep labels in their narrowest integer dtype; widen per tile in-kernel.
    if not jnp.issubdtype(target.dtype, jnp.integer) or target.dtype.itemsize > 4:
        target = target.astype(jnp.int32)

    # v7x megacore: with B == 1 the batch axis alone would leave one TensorCore
    # idle, so split the row range over a leading parallel axis of size 2.
    n_split = 2 if (B == 1 and rows >= 2 * _ALIGN) else 1
    tile_rows, nj, padded_rows = _plan_tiles(rows, int(max_tile_rows), n_split)
    needs_mask = padded_rows != rows

    # Free, layout-preserving reshapes (no transpose, no dtype pass).
    score = inputs.reshape(B, C, rows, _LANES)
    tgt = target.reshape(B, rows, _LANES)
    if needs_mask:
        pad = padded_rows - rows
        score = jnp.pad(score, ((0, 0), (0, 0), (0, pad), (0, 0)))
        tgt = jnp.pad(tgt, ((0, 0), (0, pad), (0, 0)))

    kernel = _make_kernel(bool(softmax), needs_mask, tile_rows, nj, rows)

    partials = pl.pallas_call(
        kernel,
        out_shape=jax.ShapeDtypeStruct((n_split, B, 3 * N_CLASSES, _LANES),
                                       jnp.float32),
        grid=(n_split, B, nj),
        in_specs=[
            pl.BlockSpec((None, N_CLASSES, tile_rows, _LANES),
                         lambda p, b, j: (b, 0, p * nj + j, 0)),
            pl.BlockSpec((None, tile_rows, _LANES),
                         lambda p, b, j: (b, p * nj + j, 0)),
        ],
        out_specs=pl.BlockSpec((None, None, 3 * N_CLASSES, _LANES),
                               lambda p, b, j: (p, b, 0, 0)),
        compiler_params=pltpu.CompilerParams(
            dimension_semantics=("parallel", "parallel", "arbitrary"),
            vmem_limit_bytes=32 * 1024 * 1024),
    )(score, tgt)

    # Tiny epilogue: 12 global sums -> per-class dice -> weighted mean.
    sums = jnp.sum(partials, axis=(0, 1, 3))                   # (12,)
    intersect = sums[0:N_CLASSES]
    z_sum = sums[N_CLASSES:2 * N_CLASSES]
    y_sum = sums[2 * N_CLASSES:3 * N_CLASSES]
    dice = 1.0 - (2.0 * intersect + SMOOTH) / (z_sum + y_sum + SMOOTH)
    w = jnp.asarray(weight, dtype=jnp.float32).reshape(N_CLASSES)
    return jnp.sum(dice * w) / 4.0


def _reference(inputs, target, weight, softmax=False):
    """Pure-JAX reference mirroring the PyTorch module exactly."""
    x = inputs.astype(jnp.float32)
    if softmax:
        x = jax.nn.sigmoid(x)
    t = target.astype(jnp.float32)

    def dice(score, tgt):
        intersect = jnp.sum(score * tgt)
        y_sum = jnp.sum(tgt * tgt)
        z_sum = jnp.sum(score * score)
        return 1.0 - (2.0 * intersect + SMOOTH) / (z_sum + y_sum + SMOOTH)

    d0 = dice(x[:, 0], (t == 0).astype(jnp.float32))
    d1 = dice(x[:, 1], (t == 3).astype(jnp.float32))
    d2 = dice(x[:, 2], jnp.logical_or(t == 3, t == 1).astype(jnp.float32))
    d3 = dice(x[:, 3], (t != 0).astype(jnp.float32))
    w = jnp.asarray(weight, dtype=jnp.float32)
    return (d0 * w[0] + d1 * w[1] + d2 * w[2] + d3 * w[3]) / 4.0


if __name__ == "__main__":
    root = jax.random.PRNGKey(0)
    keys = jax.random.split(root, 6)
    weight = jnp.array([1.0, 2.0, 3.0, 4.0], dtype=jnp.float32)

    def check(inputs, target, softmax, rtol, atol, **kw):
        got = jax.block_until_ready(
            dice_loss_area(inputs, target, weight, softmax=softmax, **kw))
        ref = _reference(inputs, target, weight, softmax=softmax)
        assert jnp.allclose(got, ref, rtol=rtol, atol=atol), (got, ref)

    C = N_CLASSES

    # 1) Small shape, full-extent single block, f32 scores + uint8 labels.
    B, H, W = 2, 16, 16
    x1 = jax.random.uniform(keys[0], (B, C, H, W), dtype=jnp.float32)
    t1 = jax.random.randint(keys[1], (B, H, W), 0, 4).astype(jnp.uint8)
    check(x1, t1, False, 1e-4, 1e-5)
    check(x1, t1, True, 1e-4, 1e-5)

    # 2) Multi-step accumulation + padding/mask path (rows=120, tile=32, nj=4).
    B2, H2, W2 = 2, 120, 128
    x2 = jax.random.uniform(keys[2], (B2, C, H2, W2), dtype=jnp.float32)
    t2 = jax.random.randint(keys[3], (B2, H2, W2), 0, 4).astype(jnp.uint8)
    check(x2, t2, False, 1e-4, 1e-5, max_tile_rows=32)
    check(x2, t2, True, 1e-4, 1e-5, max_tile_rows=32)

    # 3) bf16 scores + B=1 megacore split path (rows=128 -> 2 x 64-row tiles).
    B3, H3, W3 = 1, 128, 128
    x3 = jax.random.uniform(keys[4], (B3, C, H3, W3)).astype(jnp.bfloat16)
    t3 = jax.random.randint(keys[5], (B3, H3, W3), 0, 4).astype(jnp.uint8)
    check(x3, t3, True, 1e-3, 1e-4)

    print("KERNEL_OK")
</pallas_src>

<mosaic_0001>
module attributes {stable_mosaic.version = 11 : i64} {
  func.func @kernel(%arg0: i32, %arg1: i32, %arg2: i32, %arg3: memref<1x4x2x128xf32, #tpu.memory_space<vmem>>, %arg4: memref<1x2x128xi8, #tpu.memory_space<vmem>>, %arg5: memref<1x1x12x128xf32, #tpu.memory_space<vmem>>) attributes {dimension_semantics = [#tpu.dimension_semantics<parallel>, #tpu.dimension_semantics<parallel>, #tpu.dimension_semantics<arbitrary>], iteration_bounds = array<i64: 1, 2, 1>, scalar_prefetch = 0 : i64, scratch_operands = 0 : i64, tpu.core_type = #tpu.core_type<tc>, window_params = [{transform_indices = @transform_0, window_bounds = array<i64: 1, 4, 2, 128>}, {transform_indices = @transform_1, window_bounds = array<i64: 1, 2, 128>}, {transform_indices = @transform_2, window_bounds = array<i64: 1, 1, 12, 128>}]} {
    %c0_i32 = arith.constant 0 : i32
    %0 = arith.cmpi eq, %arg2, %c0_i32 : i32
    %1 = arith.extui %0 : i1 to i32
    %c0_i32_0 = arith.constant 0 : i32
    %2 = arith.cmpi ne, %1, %c0_i32_0 : i32
    scf.if %2 {
      %cst_37 = arith.constant 0.000000e+00 : f32
      %69 = vector.broadcast %cst_37 : f32 to vector<12x128xf32>
      %c0_38 = arith.constant 0 : index
      %c0_39 = arith.constant 0 : index
      %c0_40 = arith.constant 0 : index
      %c0_41 = arith.constant 0 : index
      %70 = vector.load %arg5[%c0_38, %c0_39, %c0_40, %c0_41] : memref<1x1x12x128xf32, #tpu.memory_space<vmem>>, vector<1x1x12x128xf32>
      %71 = vector.shape_cast %70 : vector<1x1x12x128xf32> to vector<12x128xf32>
      %72 = vector.shape_cast %69 : vector<12x128xf32> to vector<1x1x12x128xf32>
      tpu.vector_store %arg5[%c0_38, %c0_39, %c0_40, %c0_41], %72 {strides = array<i32>} : memref<1x1x12x128xf32, #tpu.memory_space<vmem>>, vector<1x1x12x128xf32>,
    } else {
    }
    %c0 = arith.constant 0 : index
    %c0_1 = arith.constant 0 : index
    %c0_2 = arith.constant 0 : index
    %3 = vector.load %arg4[%c0, %c0_1, %c0_2] : memref<1x2x128xi8, #tpu.memory_space<vmem>>, vector<1x2x128xi8>
    %4 = vector.shape_cast %3 : vector<1x2x128xi8> to vector<2x128xi8>
    %5 = arith.extui %4 : vector<2x128xi8> to vector<2x128xi32>
    %c0_i32_3 = arith.constant 0 : i32
    %6 = vector.broadcast %c0_i32_3 : i32 to vector<2x128xi32>
    %7 = arith.cmpi eq, %5, %6 : vector<2x128xi32>
    %8 = arith.extui %7 : vector<2x128xi1> to vector<2x128xi32>
    %9 = arith.sitofp %8 : vector<2x128xi32> to vector<2x128xf32>
    %c3_i32 = arith.constant 3 : i32
    %10 = vector.broadcast %c3_i32 : i32 to vector<2x128xi32>
    %11 = arith.cmpi eq, %5, %10 : vector<2x128xi32>
    %12 = arith.extui %11 : vector<2x128xi1> to vector<2x128xi32>
    %13 = arith.sitofp %12 : vector<2x128xi32> to vector<2x128xf32>
    %c1_i32 = arith.constant 1 : i32
    %14 = vector.broadcast %c1_i32 : i32 to vector<2x128xi32>
    %15 = arith.cmpi eq, %5, %14 : vector<2x128xi32>
    %16 = arith.extui %15 : vector<2x128xi1> to vector<2x128xi32>
    %17 = arith.sitofp %16 : vector<2x128xi32> to vector<2x128xf32>
    %18 = arith.addf %13, %17 : vector<2x128xf32>
    %cst = arith.constant 1.000000e+00 : f32
    %19 = vector.broadcast %cst : f32 to vector<2x128xf32>
    %20 = arith.subf %19, %9 : vector<2x128xf32>
    %c0_4 = arith.constant 0 : index
    %c0_5 = arith.constant 0 : index
    %c0_6 = arith.constant 0 : index
    %c0_7 = arith.constant 0 : index
    %21 = vector.load %arg3[%c0_4, %c0_5, %c0_6, %c0_7] : memref<1x4x2x128xf32, #tpu.memory_space<vmem>>, vector<1x1x2x128xf32>
    %22 = vector.shape_cast %21 : vector<1x1x2x128xf32> to vector<2x128xf32>
    %23 = arith.mulf %22, %9 : vector<2x128xf32>
    %cst_8 = arith.constant dense<0.000000e+00> : vector<128xf32>
    %24 = vector.multi_reduction <add>, %23, %cst_8 [0] : vector<2x128xf32> to vector<128xf32>
    %25 = vector.shape_cast %24 : vector<128xf32> to vector<1x128xf32>
    %26 = arith.mulf %22, %22 : vector<2x128xf32>
    %cst_9 = arith.constant dense<0.000000e+00> : vector<128xf32>
    %27 = vector.multi_reduction <add>, %26, %cst_9 [0] : vector<2x128xf32> to vector<128xf32>
    %28 = vector.shape_cast %27 : vector<128xf32> to vector<1x128xf32>
    %c0_10 = arith.constant 0 : index
    %c1 = arith.constant 1 : index
    %c0_11 = arith.constant 0 : index
    %c0_12 = arith.constant 0 : index
    %29 = vector.load %arg3[%c0_10, %c1, %c0_11, %c0_12] : memref<1x4x2x128xf32, #tpu.memory_space<vmem>>, vector<1x1x2x128xf32>
    %30 = vector.shape_cast %29 : vector<1x1x2x128xf32> to vector<2x128xf32>
    %31 = arith.mulf %30, %13 : vector<2x128xf32>
    %cst_13 = arith.constant dense<0.000000e+00> : vector<128xf32>
    %32 = vector.multi_reduction <add>, %31, %cst_13 [0] : vector<2x128xf32> to vector<128xf32>
    %33 = vector.shape_cast %32 : vector<128xf32> to vector<1x128xf32>
    %34 = arith.mulf %30, %30 : vector<2x128xf32>
    %cst_14 = arith.constant dense<0.000000e+00> : vector<128xf32>
    %35 = vector.multi_reduction <add>, %34, %cst_14 [0] : vector<2x128xf32> to vector<128xf32>
    %36 = vector.shape_cast %35 : vector<128xf32> to vector<1x128xf32>
    %c0_15 = arith.constant 0 : index
    %c2 = arith.constant 2 : index
    %c0_16 = arith.constant 0 : index
    %c0_17 = arith.constant 0 : index
    %37 = vector.load %arg3[%c0_15, %c2, %c0_16, %c0_17] : memref<1x4x2x128xf32, #tpu.memory_space<vmem>>, vector<1x1x2x128xf32>
    %38 = vector.shape_cast %37 : vector<1x1x2x128xf32> to vector<2x128xf32>
    %39 = arith.mulf %38, %18 : vector<2x128xf32>
    %cst_18 = arith.constant dense<0.000000e+00> : vector<128xf32>
    %40 = vector.multi_reduction <add>, %39, %cst_18 [0] : vector<2x128xf32> to vector<128xf32>
    %41 = vector.shape_cast %40 : vector<128xf32> to vector<1x128xf32>
    %42 = arith.mulf %38, %38 : vector<2x128xf32>
    %cst_19 = arith.constant dense<0.000000e+00> : vector<128xf32>
    %43 = vector.multi_reduction <add>, %42, %cst_19 [0] : vector<2x128xf32> to vector<128xf32>
    %44 = vector.shape_cast %43 : vector<128xf32> to vector<1x128xf32>
    %c0_20 = arith.constant 0 : index
    %c3 = arith.constant 3 : index
    %c0_21 = arith.constant 0 : index
    %c0_22 = arith.constant 0 : index
    %45 = vector.load %arg3[%c0_20, %c3, %c0_21, %c0_22] : memref<1x4x2x128xf32, #tpu.memory_space<vmem>>, vector<1x1x2x128xf32>
    %46 = vector.shape_cast %45 : vector<1x1x2x128xf32> to vector<2x128xf32>
    %47 = arith.mulf %46, %20 : vector<2x128xf32>
    %cst_23 = arith.constant dense<0.000000e+00> : vector<128xf32>
    %48 = vector.multi_reduction <add>, %47, %cst_23 [0] : vector<2x128xf32> to vector<128xf32>
    %49 = vector.shape_cast %48 : vector<128xf32> to vector<1x128xf32>
    %50 = arith.mulf %46, %46 : vector<2x128xf32>
    %cst_24 = arith.constant dense<0.000000e+00> : vector<128xf32>
    %51 = vector.multi_reduction <add>, %50, %cst_24 [0] : vector<2x128xf32> to vector<128xf32>
    %52 = vector.shape_cast %51 : vector<128xf32> to vector<1x128xf32>
    %cst_25 = arith.constant dense<0.000000e+00> : vector<128xf32>
    %53 = vector.multi_reduction <add>, %9, %cst_25 [0] : vector<2x128xf32> to vector<128xf32>
    %54 = vector.shape_cast %53 : vector<128xf32> to vector<1x128xf32>
    %cst_26 = arith.constant dense<0.000000e+00> : vector<128xf32>
    %55 = vector.multi_reduction <add>, %13, %cst_26 [0] : vector<2x128xf32> to vector<128xf32>
    %56 = vector.shape_cast %55 : vector<128xf32> to vector<1x128xf32>
    %cst_27 = arith.constant dense<0.000000e+00> : vector<128xf32>
    %57 = vector.multi_reduction <add>, %17, %cst_27 [0] : vector<2x128xf32> to vector<128xf32>
    %58 = vector.shape_cast %57 : vector<128xf32> to vector<1x128xf32>
    %59 = arith.addf %56, %58 : vector<1x128xf32>
    %cst_28 = arith.constant 2.000000e+00 : f32
    %60 = vector.broadcast %cst_28 : f32 to vector<1x128xf32>
    %61 = arith.subf %60, %54 : vector<1x128xf32>
    %c0_29 = arith.constant 0 : index
    %c0_30 = arith.constant 0 : index
    %c0_31 = arith.constant 0 : index
    %c0_32 = arith.constant 0 : index
    %62 = vector.load %arg5[%c0_29, %c0_30, %c0_31, %c0_32] : memref<1x1x12x128xf32, #tpu.memory_space<vmem>>, vector<1x1x12x128xf32>
    %63 = vector.shape_cast %62 : vector<1x1x12x128xf32> to vector<12x128xf32>
    %64 = tpu.concatenate %25, %33, %41, %49, %28, %36, %44, %52, %54, %56, %59, %61 in 0 : vector<1x128xf32>, vector<1x128xf32>, vector<1x128xf32>, vector<1x128xf32>, vector<1x128xf32>, vector<1x128xf32>, vector<1x128xf32>, vector<1x128xf32>, vector<1x128xf32>, vector<1x128xf32>, vector<1x128xf32>, vector<1x128xf32> -> vector<12x128xf32>
    %65 = arith.addf %63, %64 : vector<12x128xf32>
    %c0_33 = arith.constant 0 : index
    %c0_34 = arith.constant 0 : index
    %c0_35 = arith.constant 0 : index
    %c0_36 = arith.constant 0 : index
    %66 = vector.load %arg5[%c0_33, %c0_34, %c0_35, %c0_36] : memref<1x1x12x128xf32, #tpu.memory_space<vmem>>, vector<1x1x12x128xf32>
    %67 = vector.shape_cast %66 : vector<1x1x12x128xf32> to vector<12x128xf32>
    %68 = vector.shape_cast %65 : vector<12x128xf32> to vector<1x1x12x128xf32>
    tpu.vector_store %arg5[%c0_33, %c0_34, %c0_35, %c0_36], %68 {strides = array<i32>} : memref<1x1x12x128xf32, #tpu.memory_space<vmem>>, vector<1x1x12x128xf32>,
    return
  }
  func.func @transform_0(%arg0: i32, %arg1: i32, %arg2: i32) -> (i32, i32, i32, i32) {
    %c1_i32 = arith.constant 1 : i32
    %0 = arith.muli %arg0, %c1_i32 : i32
    %1 = arith.addi %0, %arg2 : i32
    %c0_i32 = arith.constant 0 : i32
    %c0_i32_0 = arith.constant 0 : i32
    %c0_i32_1 = arith.constant 0 : i32
    return %arg1, %c0_i32, %1, %c0_i32_0 : i32, i32, i32, i32
  }
  func.func @transform_1(%arg0: i32, %arg1: i32, %arg2: i32) -> (i32, i32, i32) {
    %c1_i32 = arith.constant 1 : i32
    %0 = arith.muli %arg0, %c1_i32 : i32
    %1 = arith.addi %0, %arg2 : i32
    %c0_i32 = arith.constant 0 : i32
    %c0_i32_0 = arith.constant 0 : i32
    return %arg1, %1, %c0_i32 : i32, i32, i32
  }
  func.func @transform_2(%arg0: i32, %arg1: i32, %arg2: i32) -> (i32, i32, i32, i32) {
    %c0_i32 = arith.constant 0 : i32
    %c0_i32_0 = arith.constant 0 : i32
    %c0_i32_1 = arith.constant 0 : i32
    return %arg0, %arg1, %c0_i32, %c0_i32_0 : i32, i32, i32, i32
  }
}

</mosaic_0001>

<bundles_post_ra>
// kernel: dice_loss_area.1
= control target key start
LH: loop header
LB: loop body
LE: loop exit
PB: predicated region body
PF: predicated region fallthrough
CT: control target
= control target key end

     0   :  { %s548_s9 = smov 0   ;;  %s550_s10 = smov 0   ;;  %s611_s0 = inlined_call_operand.vmem [shape: f32[2,4,2,128], index: 0, kind: input, shape index: {}]   ;;  %s612_s1 = inlined_call_operand.vmem [shape: u8[2,2,128], index: 1, kind: input, shape index: {}]   ;;  %s613_s2 = inlined_call_operand.vmem [shape: f32[1,2,12,128], index: 2, kind: output, shape index: {}]  }
   0x1   :  { %s552_s11 = smov 0  }
   0x2 LB: > { %s27_s12 = sadd.s32 1, %s526_s10  ;;  %p468_p0 = scmp.ge.s32.totalorder %s530_s11, 1  ;;  %s530_s11 = sphi %s552_s11, %s12_s11   ;;  %s526_s10 = sphi %s550_s10, %s615_s10   ;;  %s522_s9 = sphi %s548_s9, %s614_s9  }
   0x3   : > { %p29_p1 = scmp.ge.s32.totalorder %s27_s12, 2  ;;  %p159_p2 = scmp.lt.s32.totalorder %s530_s11, 3 }
   0x5   : > { %s617_s12 = smov (%p29_p1, %s27_s12), 0  ;;  %p160_p3 = pnand %p468_p0, %p159_p2 }
   0x6   : > { %p197_p4 = scmp.lt.s32.totalorder (!%p160_p3), %s522_s9, 1 }
   0x7   : > { %163 = sbr.rel (%p160_p3) target bundleno = 50 (0x32), region = 28 }
   0xc   : > { %s619_s9 = smov (!%p197_p4, %s522_s9), 1  ;;  %v532_v8 = vmov 0.0   ;;  %vm245_vm0 = vcmask 1041408   ;;  %vm340_vm4 = vcmask 1040384   ;;  %vm343_vm5 = vcmask 1042432  }
   0xd   : > { %s481_s13 = sshll.u32 %s619_s9, 3  ;;  %s212_s16 = scalar_lea.vmem %s612_s1, %s619_s9  ;;  %vm345_vm6 = vcmask 1043456   ;;  %vm347_vm7 = vcmask 1044480   ;;  %vm349_vm8 = vcmask 1045504   ;;  %vm351_vm9 = vcmask 1046528  }
   0xe   : > { %s204_s19 = scalar_lea.vmem %s611_s0, %s481_s13  ;;  %s482_s20 = sshll.u32 %s619_s9, 4  ;;  %v229_v0 = vld [vmem:[%s212_s16] sm:$0x1] }
   0xf   : > { %s575_s23 = scalar_lea.vmem %s613_s2, %s482_s20  ;;  %v230_v1 = vunpack.c.0.s8 %v229_v0  ;;  %v243_v2 = vld [vmem:[%s204_s19] sm:$0x3]  ;;  %v476_v3 = vld [vmem:[%s204_s19 + $0x2] sm:$0x3]  ;;  %v477_v4 = vld [vmem:[%s204_s19 + $0x4] sm:$0x3] }
  0x10   : > { %v253_v5 = vmul.f32 %v243_v2, %v243_v2  ;;  %v271_v6 = vmul.f32 %v476_v3, %v476_v3  ;;  %v289_v7 = vmul.f32 %v477_v4, %v477_v4  ;;  %228 = vst [vmem:[%s575_s23 + $0x8] sm:$0xf] %v532_v8  ;;  %v478_v10 = vld [vmem:[%s204_s19 + $0x6] sm:$0x3] }
  0x11   : > { %v231_v9 = vand.u32 255, %v230_v1  ;;  %v581_v14 = vmul.f32 %v478_v10, %v478_v10 }
  0x12   : > { %v254_v11 = vsel %vm245_vm0, %v253_v5, 0.0  ;;  %v272_v12 = vsel %vm245_vm0, %v271_v6, 0.0  ;;  %v290_v13 = vsel %vm245_vm0, %v289_v7, 0.0 }
  0x13   : > { %vm232_vm1 = vcmp.eq.s32.totalorder %v231_v9, 0  ;;  %vm235_vm2 = vcmp.eq.s32.totalorder %v231_v9, 3  ;;  %vm238_vm3 = vcmp.eq.s32.totalorder %v231_v9, 1  ;;  %v255_v15 = vrot.slane %v254_v11, 4 }
  0x14   : > { %v473_v16 = vsel %vm232_vm1, 1.0, %v532_v8  ;;  %v474_v17 = vsel %vm235_vm2, 1.0, %v532_v8  ;;  %v475_v18 = vsel %vm238_vm3, 1.0, %v532_v8  ;;  %v273_v19 = vrot.slane %v272_v12, 4 }
  0x15   : > { %v241_v20 = vadd.f32 %v475_v18, %v474_v17  ;;  %v242_v21 = vsub.f32 1.0, %v473_v16  ;;  %v244_v22 = vmul.f32 %v473_v16, %v243_v2  ;;  %v256_v23 = vadd.f32 %v255_v15, %v254_v11 }
  0x16   : > { %v263_v24 = vmul.f32 %v476_v3, %v474_v17  ;;  %v315_v25 = vsel %vm245_vm0, %v473_v16, 0.0  ;;  %v322_v26 = vsel %vm245_vm0, %v474_v17, 0.0  ;;  %v329_v27 = vsel %vm245_vm0, %v475_v18, 0.0 }
  0x17   : > { %v246_v28 = vsel %vm245_vm0, %v244_v22, 0.0  ;;  %v281_v29 = vmul.f32 %v477_v4, %v241_v20  ;;  %v299_v30 = vmul.f32 %v478_v10, %v242_v21  ;;  %v316_v31 = vrot.slane %v315_v25, 4 }
  0x18   : > { %v247_v32 = vrot.slane %v246_v28, 4  ;;  %v264_v33 = vsel %vm245_vm0, %v263_v24, 0.0  ;;  %v323_v34 = vrot.slane %v322_v26, 4  ;;  %v330_v35 = vrot.slane %v329_v27, 4 }
  0x19   : > { %v265_v36 = vrot.slane %v264_v33, 4  ;;  %v282_v37 = vsel %vm245_vm0, %v281_v29, 0.0  ;;  %v300_v38 = vsel %vm245_vm0, %v299_v30, 0.0  ;;  %v317_v39 = vadd.f32 %v316_v31, %v315_v25 }
  0x1a   : > { %v248_v40 = vadd.f32 %v247_v32, %v246_v28  ;;  %v283_v41 = vrot.slane %v282_v37, 4  ;;  %v301_v42 = vrot.slane %v300_v38, 4  ;;  %v324_v43 = vadd.f32 %v323_v34, %v322_v26 }
  0x1b   : > { %v266_v44 = vadd.f32 %v265_v36, %v264_v33  ;;  %v331_v45 = vadd.f32 %v330_v35, %v329_v27  ;;  %v257_v46 = vrot.slane %v256_v23, 2  ;;  %v274_v47 = vadd.f32 %v273_v19, %v272_v12 }
  0x1c   : > { %v249_v48 = vrot.slane %v248_v40, 2  ;;  %v284_v49 = vadd.f32 %v283_v41, %v282_v37  ;;  %v302_v50 = vadd.f32 %v301_v42, %v300_v38  ;;  %v325_v51 = vrot.slane %v324_v43, 2 }
  0x1d   : > { %v267_v52 = vrot.slane %v266_v44, 2  ;;  %v332_v53 = vrot.slane %v331_v45, 2  ;;  %v258_v54 = vadd.f32 %v257_v46, %v256_v23  ;;  %v275_v55 = vrot.slane %v274_v47, 2 }
  0x1e   : > { %v250_v56 = vadd.f32 %v249_v48, %v248_v40  ;;  %v285_v57 = vrot.slane %v284_v49, 2  ;;  %v303_v58 = vrot.slane %v302_v50, 2  ;;  %v291_v59 = vrot.slane %v290_v13, 4  ;;  %v339_v40 = vld [vmem:[%s575_s23 + $0x8] sm:$0xf] }
  0x1f   : > { %v268_v60 = vadd.f32 %v267_v52, %v266_v44  ;;  %v333_v61 = vadd.f32 %v332_v53, %v331_v45  ;;  %v259_v62 = vrot.slane %v258_v54, 1  ;;  %v276_v63 = vadd.f32 %v275_v55, %v274_v47 }
  0x20   : > { %v251_v0 = vrot.slane %v250_v56, 1  ;;  %v286_v1 = vadd.f32 %v285_v57, %v284_v49  ;;  %v292_v2 = vadd.f32 %v291_v59, %v290_v13  ;;  %v304_v3 = vadd.f32 %v303_v58, %v302_v50 }
  0x21   : > { %v269_v4 = vrot.slane %v268_v60, 1  ;;  %v260_v5 = vadd.f32 %v259_v62, %v258_v54  ;;  %v277_v6 = vrot.slane %v276_v63, 1  ;;  %v308_v7 = vsel %vm245_vm0, %v581_v14, 0.0 }
  0x22   : > { %v252_v8 = vadd.f32 %v251_v0, %v250_v56  ;;  %v287_v9 = vrot.slane %v286_v1, 1  ;;  %v293_v10 = vrot.slane %v292_v2, 2  ;;  %v305_v11 = vrot.slane %v304_v3, 1 }
  0x23   : > { %v270_v12 = vadd.f32 %v269_v4, %v268_v60  ;;  %v278_v15 = vadd.f32 %v277_v6, %v276_v63  ;;  %v309_v16 = vrot.slane %v308_v7, 4  ;;  %v318_v17 = vrot.slane %v317_v39, 2 }
  0x24   : > { %v288_v18 = vadd.f32 %v287_v9, %v286_v1  ;;  %v294_v19 = vadd.f32 %v293_v10, %v292_v2  ;;  %v306_v20 = vadd.f32 %v305_v11, %v304_v3  ;;  %v326_v21 = vadd.f32 %v325_v51, %v324_v43 }
  0x25   : > { %v310_v13 = vadd.f32 %v309_v16, %v308_v7  ;;  %v341_v22 = vsel %vm340_vm4, %v252_v8, %v270_v12  ;;  %v319_v23 = vadd.f32 %v318_v17, %v317_v39  ;;  %v334_v24 = vrot.slane %v333_v61, 1 }
  0x26   : > { %v295_v25 = vrot.slane %v294_v19, 1  ;;  %v342_v14 = vsel %vm245_vm0, %v341_v22, %v288_v18  ;;  %v327_v26 = vrot.slane %v326_v21, 1 }
  0x27   : > { %v311_v27 = vrot.slane %v310_v13, 2  ;;  %v344_v28 = vsel %vm343_vm5, %v342_v14, %v306_v20  ;;  %v320_v29 = vrot.slane %v319_v23, 1  ;;  %v335_v30 = vadd.f32 %v334_v24, %v333_v61 }
  0x28   : > { %v296_v31 = vadd.f32 %v295_v25, %v294_v19  ;;  %v346_v32 = vsel %vm345_vm6, %v344_v28, %v260_v5  ;;  %v328_v33 = vadd.f32 %v327_v26, %v326_v21 }
  0x29   : > { %v312_v34 = vadd.f32 %v311_v27, %v310_v13  ;;  %v348_v35 = vsel %vm347_vm7, %v346_v32, %v278_v15  ;;  %v321_v36 = vadd.f32 %v320_v29, %v319_v23 }
  0x2a   : > { %v336_v37 = vadd.f32 %v335_v30, %v328_v33  ;;  %v350_v42 = vsel %vm349_vm8, %v348_v35, %v296_v31 }
  0x2b   : > { %v313_v38 = vrot.slane %v312_v34, 1  ;;  %v337_v39 = vsub.f32 2.0, %v321_v36  ;;  %v353_v41 = vsel %vm340_vm4, %v321_v36, %v328_v33 }
  0x2c   : > { %v354_v43 = vsel %vm245_vm0, %v353_v41, %v336_v37 }
  0x2d   : > { %v314_v44 = vadd.f32 %v313_v38, %v312_v34  ;;  %v355_v45 = vsel %vm343_vm5, %v354_v43, %v337_v39 }
  0x2e   : > { %v357_v46 = vadd.f32 %v355_v45, %v339_v40 }
  0x2f   : > { %v352_v47 = vsel %vm351_vm9, %v350_v42, %v314_v44 }
  0x30   : > { %359 = vst [vmem:[%s575_s23 + $0x8] sm:$0xf] %v357_v46 }
  0x31   : > { %358 = vst [vmem:[%s575_s23] sm:$0xff] %v352_v47 }
  0x32 PF: > { %s12_s11 = sadd.s32 1, %s530_s11   ;;  %s614_s9 = smov %s526_s10 }
  0x33   : > { %p9_p5 = scmp.ge.s32.totalorder %s12_s11, 4   ;;  %s615_s10 = smov %s617_s12 }
  0x35   :  { %11 = sbr.rel (!%p9_p5) target bundleno = 2 (0x2), region = 68 }

</bundles_post_ra>
